<compile_context>
chip_gen: v6e
topology: v6e:2x2x1
jax: 0.10.0
libtpu: 0.0.40
codegen_flags: <defaults>
</compile_context>

<pallas_src>
import functools
import math

import jax
import jax.numpy as jnp
from jax import lax
from jax.experimental import pallas as pl
from jax.experimental.pallas import tpu as pltpu

_VMEM = pl.BlockSpec(memory_space=pltpu.MemorySpace.VMEM)
_VMEM_LIMIT = 48 * 1024 * 1024  # fits v7x's 64 MiB/TC, well under v5e/v6e's 128 MiB


# ------------------------------ small helpers ------------------------------ #

def _gelu_tanh(x):
    return 0.5 * x * (1.0 + jnp.tanh(0.7978845608028654 * (x + 0.044715 * x * x * x)))


def _layernorm(x, g, b, eps):
    mu = jnp.mean(x, axis=-1, keepdims=True)
    var = jnp.mean((x - mu) * (x - mu), axis=-1, keepdims=True)
    return (x - mu) * lax.rsqrt(var + eps) * g + b


# ----------------------- fused prefix (CLIP + heads) ----------------------- #

def _prefix_kernel(img_ref, enc_w, enc_b, proj_w, proj_b, fc_w, fc_b,
                   ln_g, ln_b, tr_w, tr_b, o_ref):
    # TODO(synk): CLIPModel's ResNet/ViT image backbone is not provided; it is
    # abbreviated to a single frozen linear feature extractor on the flat image.
    feat = jnp.dot(img_ref[...], enc_w[...],
                   preferred_element_type=jnp.float32) + enc_b[...]          # (B, E)

    # ProjectionHead: proj -> gelu -> fc -> (+proj residual) -> LayerNorm
    projected = jnp.dot(feat, proj_w[...],
                        preferred_element_type=jnp.float32) + proj_b[...]
    h = _gelu_tanh(projected)
    h = jnp.dot(h, fc_w[...], preferred_element_type=jnp.float32) + fc_b[...]
    h = _layernorm(h + projected, ln_g[...], ln_b[...], 1e-5)

    # TODO(synk): TransferHead definition not provided; implemented as a single
    # Linear(projection_dim -> n_embd).
    o_ref[...] = jnp.dot(h, tr_w[...], preferred_element_type=jnp.float32) + tr_b[...]


def pallas_prefix(images_flat, p):
    bsz = images_flat.shape[0]
    e = p["enc_w"].shape[1]
    pd = p["proj_w"].shape[1]
    d = p["transfer_w"].shape[1]
    return pl.pallas_call(
        _prefix_kernel,
        out_shape=jax.ShapeDtypeStruct((bsz, d), jnp.float32),
        in_specs=[_VMEM] * 11,
        out_specs=_VMEM,
        compiler_params=pltpu.CompilerParams(vmem_limit_bytes=_VMEM_LIMIT),
    )(images_flat,
      p["enc_w"], p["enc_b"].reshape(1, e),
      p["proj_w"], p["proj_b"].reshape(1, pd),
      p["proj_fc_w"], p["proj_fc_b"].reshape(1, pd),
      p["proj_ln_g"].reshape(1, pd), p["proj_ln_b"].reshape(1, pd),
      p["transfer_w"], p["transfer_b"].reshape(1, d))


# -------- fused GPT2 transformer: all layers in ONE pallas_call ------------- #

def _gpt2_stack_kernel(x_ref, ln1_g, ln1_b, wqkv, bqkv, wo, bo,
                       ln2_g, ln2_b, wfc, bfc, wmp, bmp,
                       o_ref, *, n_head, scale, eps):
    layer = pl.program_id(0)

    @pl.when(layer == 0)
    def _():
        o_ref[...] = x_ref[...]          # bring the activation VMEM-resident once

    x = o_ref[...]                        # (B, T, D) f32, resident across layers
    bsz, t, d = x.shape
    hs = d // n_head

    # --- attention branch: x = x + Wo @ (softmax(QK^T / sqrt(hs)) V) ---
    h = _layernorm(x, ln1_g[0], ln1_b[0], eps)
    h2 = h.reshape(bsz * t, d).astype(jnp.bfloat16)
    qkv = jnp.dot(h2, wqkv[0], preferred_element_type=jnp.float32) + bqkv[0]  # (B*T, 3D)
    qkv = qkv.reshape(bsz, t, 3 * d)

    row = lax.broadcasted_iota(jnp.int32, (t, t), 0)
    col = lax.broadcasted_iota(jnp.int32, (t, t), 1)
    causal = (col <= row)[None, :, :]

    # TODO(synk): at GPT2-medium scale (long T), replace the per-head loop with a
    # fully head-batched dot + flash-style KV tiling; at toy sizes the B-batched
    # dots below already keep the MXU fed and everything is VMEM-resident.
    o_heads = []
    for hd in range(n_head):
        q_h = qkv[:, :, hd * hs:(hd + 1) * hs].astype(jnp.bfloat16)
        k_h = qkv[:, :, d + hd * hs:d + (hd + 1) * hs].astype(jnp.bfloat16)
        v_h = qkv[:, :, 2 * d + hd * hs:2 * d + (hd + 1) * hs].astype(jnp.bfloat16)
        s = jnp.einsum('bqd,bkd->bqk', q_h, k_h,
                       preferred_element_type=jnp.float32) * scale            # (B, T, T)
        s = jnp.where(causal, s, -1e30)
        s = s - jnp.max(s, axis=-1, keepdims=True)
        p = jnp.exp(s)
        p = p / jnp.sum(p, axis=-1, keepdims=True)                            # exact softmax
        o_heads.append(jnp.einsum('bqk,bkd->bqd', p.astype(jnp.bfloat16), v_h,
                                  preferred_element_type=jnp.float32))        # (B, T, hs)
    att = jnp.concatenate(o_heads, axis=-1)                                   # (B, T, D)
    att = att.reshape(bsz * t, d).astype(jnp.bfloat16)
    att = jnp.dot(att, wo[0], preferred_element_type=jnp.float32) + bo[0]     # single dense out-proj
    x1 = x + att.reshape(bsz, t, d)

    # --- MLP branch: x = x + W2 gelu(W1 ln2(x)) ---
    h2 = _layernorm(x1, ln2_g[0], ln2_b[0], eps).reshape(bsz * t, d).astype(jnp.bfloat16)
    hfc = jnp.dot(h2, wfc[0], preferred_element_type=jnp.float32) + bfc[0]
    hfc = _gelu_tanh(hfc).astype(jnp.bfloat16)
    mlp = jnp.dot(hfc, wmp[0], preferred_element_type=jnp.float32) + bmp[0]
    o_ref[...] = x1 + mlp.reshape(bsz, t, d)


def pallas_gpt2_stack(x, p, *, n_head, eps=1e-5):
    b, t, d = x.shape
    n_layer = p["attn_w"].shape[0]
    scale = 1.0 / math.sqrt(d // n_head)
    bf16 = lambda a: a.astype(jnp.bfloat16)   # pre-cast weights ONCE at the boundary
    kernel = functools.partial(_gpt2_stack_kernel, n_head=n_head, scale=scale, eps=eps)

    def resident(shape):       # whole-activation block, resident across layer grid
        return pl.BlockSpec(shape, lambda l: (0, 0, 0))

    def per_layer(s1, s2):     # one layer's slab, streamed (auto double-buffered)
        return pl.BlockSpec((1, s1, s2), lambda l: (l, 0, 0))

    return pl.pallas_call(
        kernel,
        grid=(n_layer,),
        in_specs=[
            resident((b, t, d)),
            per_layer(1, d), per_layer(1, d),            # ln1 g / b
            per_layer(d, 3 * d), per_layer(1, 3 * d),    # qkv  w (bf16) / b
            per_layer(d, d), per_layer(1, d),            # out-proj w (bf16) / b
            per_layer(1, d), per_layer(1, d),            # ln2 g / b
            per_layer(d, 4 * d), per_layer(1, 4 * d),    # fc   w (bf16) / b
            per_layer(4 * d, d), per_layer(1, d),        # mlp-proj w (bf16) / b
        ],
        out_specs=resident((b, t, d)),
        out_shape=jax.ShapeDtypeStruct((b, t, d), jnp.float32),
        compiler_params=pltpu.CompilerParams(
            dimension_semantics=("arbitrary",),
            vmem_limit_bytes=_VMEM_LIMIT),
    )(x,
      p["ln1_g"], p["ln1_b"], bf16(p["attn_w"]), p["attn_b"],
      bf16(p["attn_proj_w"]), p["attn_proj_b"],
      p["ln2_g"], p["ln2_b"], bf16(p["fc_w"]), p["fc_b"],
      bf16(p["mlp_proj_w"]), p["mlp_proj_b"])


# ----------------- fused ln_f + tied lm_head + cross-entropy ---------------- #

def _lmhead_ce_kernel(x_ref, g_ref, b_ref, lbl_ref, msk_ref, wte_ref, loss_ref,
                      xn_ref, m_ref, l_ref, pick_ref, *, v_tile, eps):
    vi = pl.program_id(0)
    nv = pl.num_programs(0)

    @pl.when(vi == 0)
    def _():
        # final LayerNorm hoisted out of the vocab loop: computed once into bf16 scratch
        xn = _layernorm(x_ref[...], g_ref[...], b_ref[...], eps)
        xn_ref[...] = xn.astype(jnp.bfloat16)
        m_ref[...] = jnp.full_like(m_ref, -1e30)
        l_ref[...] = jnp.zeros_like(l_ref)
        pick_ref[...] = jnp.zeros_like(pick_ref)
        loss_ref[...] = jnp.zeros_like(loss_ref)

    # lane-dense logits tile: (rows, v_tile) = xn @ wte_tile^T (contract wte dim 1)
    lt = lax.dot_general(xn_ref[...], wte_ref[...], (((1,), (1,)), ((), ())),
                         preferred_element_type=jnp.float32)

    # online max / sum-exp along the lane (vocab) axis
    m_prev = m_ref[...]
    m_new = jnp.maximum(m_prev, jnp.max(lt, axis=-1, keepdims=True))          # (R, 1)
    l_ref[...] = (l_ref[...] * jnp.exp(m_prev - m_new)
                  + jnp.sum(jnp.exp(lt - m_new), axis=-1, keepdims=True))
    m_ref[...] = m_new

    # picked (label) logit via compare+select accumulation per vocab tile
    vocab_ids = lax.broadcasted_iota(jnp.int32, lt.shape, 1) + vi * v_tile
    pick_ref[...] = pick_ref[...] + jnp.sum(
        jnp.where(vocab_ids == lbl_ref[...], lt, 0.0), axis=-1, keepdims=True)

    @pl.when(vi == nv - 1)
    def _():
        lse = m_ref[...] + jnp.log(l_ref[...])                                 # (R, 1)
        # mask already zeroes the prefix position and carries the 1/(B*T_tok) mean
        per_row = (lse - pick_ref[...]) * msk_ref[...]
        loss_ref[...] = jnp.sum(per_row, axis=0, keepdims=True)


def pallas_lmhead_ce(x2d, ln_g, ln_b, wte_bf16, labels, mask, *, v_tile=None, eps=1e-5):
    r, d = x2d.shape
    v = wte_bf16.shape[0]
    if v_tile is None:
        v_tile = min(v, 1024)
    assert v % v_tile == 0
    nv = v // v_tile
    kernel = functools.partial(_lmhead_ce_kernel, v_tile=v_tile, eps=eps)
    loss = pl.pallas_call(
        kernel,
        grid=(nv,),
        in_specs=[
            pl.BlockSpec((r, d), lambda vi: (0, 0)),        # x (all batch rows, resident)
            pl.BlockSpec((1, d), lambda vi: (0, 0)),        # ln_f gamma
            pl.BlockSpec((1, d), lambda vi: (0, 0)),        # ln_f beta
            pl.BlockSpec((r, 1), lambda vi: (0, 0)),        # labels (int32)
            pl.BlockSpec((r, 1), lambda vi: (0, 0)),        # valid-row mask * 1/(B*T_tok)
            pl.BlockSpec((v_tile, d), lambda vi: (vi, 0)),  # wte tile (bf16), single pass
        ],
        out_specs=pl.BlockSpec((1, 1), lambda vi: (0, 0)),
        out_shape=jax.ShapeDtypeStruct((1, 1), jnp.float32),
        scratch_shapes=[
            pltpu.VMEM((r, d), jnp.bfloat16),   # ln_f(x), computed once
            pltpu.VMEM((r, 1), jnp.float32),    # running max
            pltpu.VMEM((r, 1), jnp.float32),    # running sum-exp
            pltpu.VMEM((r, 1), jnp.float32),    # picked (label) logits
        ],
        compiler_params=pltpu.CompilerParams(
            dimension_semantics=("arbitrary",),
            vmem_limit_bytes=_VMEM_LIMIT),
    )(x2d, ln_g.reshape(1, d), ln_b.reshape(1, d), labels, mask, wte_bf16)
    return loss[0, 0]


# --------------------------------- params ----------------------------------- #

def init_params(key, cfg):
    keys = iter(jax.random.split(key, 16))

    def nrm(shape, std=0.02):
        return jax.random.normal(next(keys), shape, jnp.float32) * std

    d = cfg["n_embd"]
    L = cfg["n_layer"]
    pd = cfg["projection_dim"]
    feat_in = cfg["img_channels"] * cfg["img_size"] * cfg["img_size"]
    return {
        # frozen CLIP image encoder (abbreviated) + projection head
        "enc_w": nrm((feat_in, cfg["image_embedding"])),
        "enc_b": jnp.zeros((cfg["image_embedding"],), jnp.float32),
        "proj_w": nrm((cfg["image_embedding"], pd)),
        "proj_b": jnp.zeros((pd,), jnp.float32),
        "proj_fc_w": nrm((pd, pd)),
        "proj_fc_b": jnp.zeros((pd,), jnp.float32),
        "proj_ln_g": jnp.ones((pd,), jnp.float32),
        "proj_ln_b": jnp.zeros((pd,), jnp.float32),
        # transfer head
        "transfer_w": nrm((pd, d)),
        "transfer_b": jnp.zeros((d,), jnp.float32),
        # GPT2 embeddings + final LN
        "wte": nrm((cfg["vocab_size"], d)),
        "wpe": nrm((cfg["block_size"], d)),
        "ln_f_g": jnp.ones((d,), jnp.float32),
        "ln_f_b": jnp.zeros((d,), jnp.float32),
        # GPT2 blocks, stacked with a leading layer axis (streamed per grid step)
        "ln1_g": jnp.ones((L, 1, d), jnp.float32),
        "ln1_b": jnp.zeros((L, 1, d), jnp.float32),
        "attn_w": nrm((L, d, 3 * d)),
        "attn_b": jnp.zeros((L, 1, 3 * d), jnp.float32),
        "attn_proj_w": nrm((L, d, d)),
        "attn_proj_b": jnp.zeros((L, 1, d), jnp.float32),
        "ln2_g": jnp.ones((L, 1, d), jnp.float32),
        "ln2_b": jnp.zeros((L, 1, d), jnp.float32),
        "fc_w": nrm((L, d, 4 * d)),
        "fc_b": jnp.zeros((L, 1, 4 * d), jnp.float32),
        "mlp_proj_w": nrm((L, 4 * d, d)),
        "mlp_proj_b": jnp.zeros((L, 1, d), jnp.float32),
    }


# -------------------------------- forward ------------------------------------ #

def forward(params, cfg, images, input_ids):
    b = images.shape[0]
    t_tok = input_ids.shape[1]
    t = t_tok + 1
    d = cfg["n_embd"]

    # frozen CLIP image encoder + image_projection + transfer head (one fused kernel)
    prefix = pallas_prefix(images.reshape(b, -1), params)                 # (B, D)

    # token embedding gather, prefix concat, positional add (host-side glue)
    tok = jnp.take(params["wte"], input_ids, axis=0)                      # (B, T_tok, D)
    x = jnp.concatenate([prefix[:, None, :], tok], axis=1)                # (B, T, D)
    x = x + params["wpe"][:t][None, :, :]                                 # drop() == identity

    # whole GPT2 transformer in a single pallas_call (activation resident in VMEM)
    x = pallas_gpt2_stack(x, params, n_head=cfg["n_head"])                # (B, T, D)

    # labels[b, p] = input_ids[b, p-1] for p >= 1; row mask folds in the mean factor.
    # Matches: cross_entropy(logits[:, 1:, :].view(-1, V), input_ids.view(-1))
    labels = jnp.concatenate(
        [jnp.zeros((b, 1), jnp.int32), input_ids.astype(jnp.int32)], axis=1
    ).reshape(b * t, 1)
    pos = jnp.broadcast_to(jnp.arange(t)[None, :], (b, t)).reshape(b * t, 1)
    mask = (pos >= 1).astype(jnp.float32) / float(b * t_tok)

    loss = pallas_lmhead_ce(
        x.reshape(b * t, d), params["ln_f_g"], params["ln_f_b"],
        params["wte"].astype(jnp.bfloat16),        # tied lm_head weight, bf16 stream
        labels, mask, v_tile=min(cfg["vocab_size"], 1024))
    return loss


# ---------------------------------- main -------------------------------------- #

if __name__ == "__main__":
    cfg = dict(
        img_channels=3,
        img_size=16,
        image_embedding=256,    # stand-in for ResNet50's 2048-d pooled feature
        projection_dim=128,     # CFG.projection_dim (lane-dense toy value)
        n_embd=128,             # stand-in for gpt2-medium's 1024 (multiple of 128)
        n_head=4,
        n_layer=2,
        vocab_size=2048,        # stand-in for 50257
        block_size=16,
    )
    key = jax.random.PRNGKey(0)
    k_params, k_img, k_ids = jax.random.split(key, 3)

    params = init_params(k_params, cfg)
    images = jax.random.normal(k_img, (2, 3, 16, 16), jnp.float32)        # NCHW like PyTorch
    input_ids = jax.random.randint(k_ids, (2, 7), 0, cfg["vocab_size"])   # T = 8 with prefix

    loss = forward(params, cfg, images, input_ids)
    jax.block_until_ready(loss)
    assert bool(jnp.isfinite(loss)), "loss is not finite"
    print("KERNEL_OK")
</pallas_src>

<mosaic_0001>
module attributes {stable_mosaic.version = 11 : i64} {
  func.func @_prefix_kernel(%arg0: memref<2x768xf32, #tpu.memory_space<vmem>>, %arg1: memref<768x256xf32, #tpu.memory_space<vmem>>, %arg2: memref<1x256xf32, #tpu.memory_space<vmem>>, %arg3: memref<256x128xf32, #tpu.memory_space<vmem>>, %arg4: memref<1x128xf32, #tpu.memory_space<vmem>>, %arg5: memref<128x128xf32, #tpu.memory_space<vmem>>, %arg6: memref<1x128xf32, #tpu.memory_space<vmem>>, %arg7: memref<1x128xf32, #tpu.memory_space<vmem>>, %arg8: memref<1x128xf32, #tpu.memory_space<vmem>>, %arg9: memref<128x128xf32, #tpu.memory_space<vmem>>, %arg10: memref<1x128xf32, #tpu.memory_space<vmem>>, %arg11: memref<2x128xf32, #tpu.memory_space<vmem>>) attributes {dimension_semantics = [], scalar_prefetch = 0 : i64, scratch_operands = 0 : i64, tpu.core_type = #tpu.core_type<tc>} {
    %c0 = arith.constant 0 : index
    %c0_0 = arith.constant 0 : index
    %0 = vector.load %arg0[%c0, %c0_0] : memref<2x768xf32, #tpu.memory_space<vmem>>, vector<2x768xf32>
    %c0_1 = arith.constant 0 : index
    %c0_2 = arith.constant 0 : index
    %1 = vector.load %arg1[%c0_1, %c0_2] : memref<768x256xf32, #tpu.memory_space<vmem>>, vector<768x256xf32>
    %cst = arith.constant dense<0.000000e+00> : vector<2x256xf32>
    %2 = tpu.matmul %0, %1, %cst {dimension_numbers = #tpu.dot_dimension_numbers<[1], [0], [0], [1], [0, 0, 1, 1], [], []>} : vector<2x768xf32>, vector<768x256xf32>, vector<2x256xf32> -> vector<2x256xf32>
    %c0_3 = arith.constant 0 : index
    %c0_4 = arith.constant 0 : index
    %3 = vector.load %arg2[%c0_3, %c0_4] : memref<1x256xf32, #tpu.memory_space<vmem>>, vector<1x256xf32>
    %4 = vector.broadcast %3 : vector<1x256xf32> to vector<2x256xf32>
    %5 = arith.addf %2, %4 : vector<2x256xf32>
    %c0_5 = arith.constant 0 : index
    %c0_6 = arith.constant 0 : index
    %6 = vector.load %arg3[%c0_5, %c0_6] : memref<256x128xf32, #tpu.memory_space<vmem>>, vector<256x128xf32>
    %cst_7 = arith.constant dense<0.000000e+00> : vector<2x128xf32>
    %7 = tpu.matmul %5, %6, %cst_7 {dimension_numbers = #tpu.dot_dimension_numbers<[1], [0], [0], [1], [0, 0, 1, 1], [], []>} : vector<2x256xf32>, vector<256x128xf32>, vector<2x128xf32> -> vector<2x128xf32>
    %c0_8 = arith.constant 0 : index
    %c0_9 = arith.constant 0 : index
    %8 = vector.load %arg4[%c0_8, %c0_9] : memref<1x128xf32, #tpu.memory_space<vmem>>, vector<1x128xf32>
    %9 = vector.broadcast %8 : vector<1x128xf32> to vector<2x128xf32>
    %10 = arith.addf %7, %9 : vector<2x128xf32>
    %cst_10 = arith.constant 5.000000e-01 : f32
    %11 = vector.broadcast %cst_10 : f32 to vector<2x128xf32>
    %12 = arith.mulf %11, %10 : vector<2x128xf32>
    %cst_11 = arith.constant 4.471500e-02 : f32
    %13 = vector.broadcast %cst_11 : f32 to vector<2x128xf32>
    %14 = arith.mulf %13, %10 : vector<2x128xf32>
    %15 = arith.mulf %14, %10 : vector<2x128xf32>
    %16 = arith.mulf %15, %10 : vector<2x128xf32>
    %17 = arith.addf %10, %16 : vector<2x128xf32>
    %cst_12 = arith.constant 0.797884583 : f32
    %18 = vector.broadcast %cst_12 : f32 to vector<2x128xf32>
    %19 = arith.mulf %18, %17 : vector<2x128xf32>
    %20 = math.tanh %19 : vector<2x128xf32>
    %cst_13 = arith.constant 1.000000e+00 : f32
    %21 = vector.broadcast %cst_13 : f32 to vector<2x128xf32>
    %22 = arith.addf %21, %20 : vector<2x128xf32>
    %23 = arith.mulf %12, %22 : vector<2x128xf32>
    %c0_14 = arith.constant 0 : index
    %c0_15 = arith.constant 0 : index
    %24 = vector.load %arg5[%c0_14, %c0_15] : memref<128x128xf32, #tpu.memory_space<vmem>>, vector<128x128xf32>
    %cst_16 = arith.constant dense<0.000000e+00> : vector<2x128xf32>
    %25 = tpu.matmul %23, %24, %cst_16 {dimension_numbers = #tpu.dot_dimension_numbers<[1], [0], [0], [1], [0, 0, 1, 1], [], []>} : vector<2x128xf32>, vector<128x128xf32>, vector<2x128xf32> -> vector<2x128xf32>
    %c0_17 = arith.constant 0 : index
    %c0_18 = arith.constant 0 : index
    %26 = vector.load %arg6[%c0_17, %c0_18] : memref<1x128xf32, #tpu.memory_space<vmem>>, vector<1x128xf32>
    %27 = vector.broadcast %26 : vector<1x128xf32> to vector<2x128xf32>
    %28 = arith.addf %25, %27 : vector<2x128xf32>
    %29 = arith.addf %28, %10 : vector<2x128xf32>
    %c0_19 = arith.constant 0 : index
    %c0_20 = arith.constant 0 : index
    %30 = vector.load %arg7[%c0_19, %c0_20] : memref<1x128xf32, #tpu.memory_space<vmem>>, vector<1x128xf32>
    %c0_21 = arith.constant 0 : index
    %c0_22 = arith.constant 0 : index
    %31 = vector.load %arg8[%c0_21, %c0_22] : memref<1x128xf32, #tpu.memory_space<vmem>>, vector<1x128xf32>
    %cst_23 = arith.constant dense<0.000000e+00> : vector<2xf32>
    %32 = vector.multi_reduction <add>, %29, %cst_23 [1] : vector<2x128xf32> to vector<2xf32>
    %33 = vector.shape_cast %32 : vector<2xf32> to vector<2x1xf32>
    %cst_24 = arith.constant 1.280000e+02 : f32
    %34 = vector.broadcast %cst_24 : f32 to vector<2x1xf32>
    %35 = arith.divf %33, %34 : vector<2x1xf32>
    %36 = vector.broadcast %35 : vector<2x1xf32> to vector<2x128xf32>
    %37 = arith.subf %29, %36 : vector<2x128xf32>
    %38 = vector.broadcast %35 : vector<2x1xf32> to vector<2x128xf32>
    %39 = arith.subf %29, %38 : vector<2x128xf32>
    %40 = arith.mulf %37, %39 : vector<2x128xf32>
    %cst_25 = arith.constant dense<0.000000e+00> : vector<2xf32>
    %41 = vector.multi_reduction <add>, %40, %cst_25 [1] : vector<2x128xf32> to vector<2xf32>
    %42 = vector.shape_cast %41 : vector<2xf32> to vector<2x1xf32>
    %cst_26 = arith.constant 1.280000e+02 : f32
    %43 = vector.broadcast %cst_26 : f32 to vector<2x1xf32>
    %44 = arith.divf %42, %43 : vector<2x1xf32>
    %45 = vector.broadcast %35 : vector<2x1xf32> to vector<2x128xf32>
    %46 = arith.subf %29, %45 : vector<2x128xf32>
    %cst_27 = arith.constant 9.99999974E-6 : f32
    %47 = vector.broadcast %cst_27 : f32 to vector<2x1xf32>
    %48 = arith.addf %44, %47 : vector<2x1xf32>
    %49 = math.rsqrt %48 : vector<2x1xf32>
    %50 = vector.broadcast %49 : vector<2x1xf32> to vector<2x128xf32>
    %51 = arith.mulf %46, %50 : vector<2x128xf32>
    %52 = vector.broadcast %30 : vector<1x128xf32> to vector<2x128xf32>
    %53 = arith.mulf %51, %52 : vector<2x128xf32>
    %54 = vector.broadcast %31 : vector<1x128xf32> to vector<2x128xf32>
    %55 = arith.addf %53, %54 : vector<2x128xf32>
    %c0_28 = arith.constant 0 : index
    %c0_29 = arith.constant 0 : index
    %56 = vector.load %arg9[%c0_28, %c0_29] : memref<128x128xf32, #tpu.memory_space<vmem>>, vector<128x128xf32>
    %cst_30 = arith.constant dense<0.000000e+00> : vector<2x128xf32>
    %57 = tpu.matmul %55, %56, %cst_30 {dimension_numbers = #tpu.dot_dimension_numbers<[1], [0], [0], [1], [0, 0, 1, 1], [], []>} : vector<2x128xf32>, vector<128x128xf32>, vector<2x128xf32> -> vector<2x128xf32>
    %c0_31 = arith.constant 0 : index
    %c0_32 = arith.constant 0 : index
    %58 = vector.load %arg10[%c0_31, %c0_32] : memref<1x128xf32, #tpu.memory_space<vmem>>, vector<1x128xf32>
    %59 = vector.broadcast %58 : vector<1x128xf32> to vector<2x128xf32>
    %60 = arith.addf %57, %59 : vector<2x128xf32>
    %c0_33 = arith.constant 0 : index
    %c0_34 = arith.constant 0 : index
    %61 = vector.load %arg11[%c0_33, %c0_34] : memref<2x128xf32, #tpu.memory_space<vmem>>, vector<2x128xf32>
    tpu.vector_store %arg11[%c0_33, %c0_34], %60 {strides = array<i32>} : memref<2x128xf32, #tpu.memory_space<vmem>>, vector<2x128xf32>,
    return
  }
}

</mosaic_0001>

<bundles_post_ra>
// kernel: tpu_custom_call.1
= control target key start
LH: loop header
LB: loop body
LE: loop exit
PB: predicated region body
PF: predicated region fallthrough
CT: control target
= control target key end

     0   :  { %16 = vsyncpa [#allocation3], 0  ;;  %s1366_s0 = inlined_call_operand.hbm [shape: f32[2,768], index: 0, kind: input, shape index: {}]   ;;  %s1367_s1 = inlined_call_operand.hbm [shape: f32[768,256], index: 1, kind: input, shape index: {}]   ;;  %s1368_s2 = inlined_call_operand.vmem [shape: f32[1,256], index: 2, kind: input, shape index: {}]   ;;  %s1369_s3 = inlined_call_operand.hbm [shape: f32[256,128], index: 3, kind: input, shape index: {}]   ;;  %s1370_s4 = inlined_call_operand.vmem [shape: f32[1,128], index: 4, kind: input, shape index: {}]   ;;  %s1371_s5 = inlined_call_operand.hbm [shape: f32[128,128], index: 5, kind: input, shape index: {}]   ;;  %s1372_s6 = inlined_call_operand.vmem [shape: f32[1,128], index: 6, kind: input, shape index: {}]   ;;  %s1373_s7 = inlined_call_operand.vmem [shape: f32[1,128], index: 7, kind: input, shape index: {}]   ;;  %s1374_s8 = inlined_call_operand.vmem [shape: f32[1,128], index: 8, kind: input, shape index: {}]   ;;  %s1375_s9 = inlined_call_operand.hbm [shape: f32[128,128], index: 9, kind: input, shape index: {}]   ;;  %s1376_s10 = inlined_call_operand.vmem [shape: f32[1,128], index: 10, kind: input, shape index: {}]   ;;  %s1377_s11 = inlined_call_operand.hbm [shape: f32[2,128], index: 11, kind: output, shape index: {}]  }
   0x1   :  { %17 = vsyncpa [#allocation6], 0 }
   0x2   :  { %18 = vsyncpa [#allocation9], 0 }
   0x3   :  { %19 = vsyncpa [#allocation4], 0  ;;  %s1202_s17 = smov [#allocation5]  }
   0x4   :  { %s35_s18 = sshll.u32 %s1202_s17, 4  ;;  %s36_s18 = int_to_ptr.vmem [resolvable:$true] %s35_s18 }
   0x5   :  { %s1082_s19 = scalar_lea.vmem %s36_s18, 24576  ;;  %p1087_p1 = scmp.lt.s32.totalorder %s36_s18, %s36_s18 }
   0x6   :  { %p1083_p0 = scmp.ne.s32.totalorder %s36_s18, %s1082_s19  ;;  %p1088_p2 = scmp.lt.s32.totalorder %s1082_s19, %s1082_s19 }
   0x8   :  { %p1089_p3 = por %p1088_p2, %p1087_p1 }
   0xa   :  { %p1090_p4 = pnand %p1089_p3, %p1083_p0 }
   0xc   :  { %1093 = shalt.err (!%p1090_p4)
}
   0xd   :  { %s1203_s20 = smov 256   ;;  %s1204_s21 = smov 16  }
   0xe   :  { %41 = dma.hbm_to_vmem [thread:$0]  %s1367_s1, 24576, %s36_s18, [#allocation6], %s1203_s20, %s1203_s20, %s1204_s21  }
   0xf   :  { %s1205_s24 = smov [#allocation8]   ;;  %s1206_s26 = smov [#allocation2]  }
  0x10   :  { %s63_s25 = sshll.u32 %s1205_s24, 4  ;;  %s26_s27 = sshll.u32 %s1206_s26, 4  ;;  %s64_s25 = int_to_ptr.vmem [resolvable:$true] %s63_s25  ;;  %s27_s27 = int_to_ptr.vmem [resolvable:$true] %s26_s27 }
  0x11   :  { %s1102_s28 = scalar_lea.vmem %s64_s25, 2048  ;;  %p1107_p6 = scmp.lt.s32.totalorder %s64_s25, %s64_s25 }
  0x12   :  { %p1103_p5 = scmp.ne.s32.totalorder %s64_s25, %s1102_s28  ;;  %p1108_p7 = scmp.lt.s32.totalorder %s1102_s28, %s1102_s28 }
  0x14   :  { %p1109_p8 = por %p1108_p7, %p1107_p6 }
  0x16   :  { %p1110_p9 = pnand %p1109_p8, %p1103_p5 }
  0x18   :  { %1113 = shalt.err (!%p1110_p9)
}
  0x19   :  { %s1207_s29 = smov 128   ;;  %s1208_s30 = smov 8  }
  0x1a   :  { %69 = dma.hbm_to_vmem [thread:$0]  %s1371_s5, 2048, %s64_s25, [#allocation9], %s1207_s29, %s1207_s29, %s1208_s30  }
  0x1b   :  { %s1122_s1 = scalar_lea.vmem %s27_s27, 192  ;;  %p1127_p11 = scmp.lt.s32.totalorder %s27_s27, %s27_s27 }
  0x1c   :  { %p1123_p10 = scmp.ne.s32.totalorder %s27_s27, %s1122_s1  ;;  %p1128_p12 = scmp.lt.s32.totalorder %s1122_s1, %s1122_s1 }
  0x1e   :  { %p1129_p13 = por %p1128_p12, %p1127_p11 }
  0x20   :  { %p1130_p0 = pnand %p1129_p13, %p1123_p10 }
  0x22   :  { %1133 = shalt.err (!%p1130_p0)
}
  0x23   :  { %29 = dma.hbm_to_vmem [thread:$0]  %s1366_s0, 192, %s27_s27, [#allocation3]  }
  0x24   :  { %s1209_s16 = smov [#allocation7]   ;;  %s1210_s18 = smov [#allocation10]  }
  0x25   :  { %s49_s17 = sshll.u32 %s1209_s16, 4  ;;  %s81_s19 = sshll.u32 %s1210_s18, 4  ;;  %s50_s17 = int_to_ptr.vmem [resolvable:$true] %s49_s17  ;;  %s82_s19 = int_to_ptr.vmem [resolvable:$true] %s81_s19 }
  0x26   :  { %s1142_s20 = scalar_lea.vmem %s50_s17, 4096  ;;  %p1147_p2 = scmp.lt.s32.totalorder %s50_s17, %s50_s17 }
  0x27   :  { %p1143_p1 = scmp.ne.s32.totalorder %s50_s17, %s1142_s20  ;;  %p1148_p3 = scmp.lt.s32.totalorder %s1142_s20, %s1142_s20 }
  0x29   :  { %p1149_p4 = por %p1148_p3, %p1147_p2 }
  0x2b   :  { %p1150_p5 = pnand %p1149_p4, %p1143_p1 }
  0x2d   :  { %1153 = shalt.err (!%p1150_p5)
}
  0x2e   :  { %55 = dma.hbm_to_vmem [thread:$0]  %s1369_s3, 4096, %s50_s17, [#allocation6], %s1207_s29, %s1207_s29, %s1208_s30  }
  0x2f   :  { %s1162_s0 = scalar_lea.vmem %s82_s19, 2048  ;;  %p1167_p7 = scmp.lt.s32.totalorder %s82_s19, %s82_s19 }
  0x30   :  { %p1163_p6 = scmp.ne.s32.totalorder %s82_s19, %s1162_s0  ;;  %p1168_p8 = scmp.lt.s32.totalorder %s1162_s0, %s1162_s0 }
  0x32   :  { %p1169_p9 = por %p1168_p8, %p1167_p7 }
  0x34   :  { %p1170_p10 = pnand %p1169_p9, %p1163_p6 }
  0x36   :  { %1173 = shalt.err (!%p1170_p10)
}
  0x37   :  { %87 = dma.hbm_to_vmem [thread:$0]  %s1375_s9, 2048, %s82_s19, [#allocation9], %s1207_s29, %s1207_s29, %s1208_s30  }
  0x38   :  { %1194 = dma.done.wait [#allocation3], 192  }
  0x39   :  { %1195 = vsyncadd [#allocation3], 4294967104 }
  0x3a   :  { %1196 = dma.done.wait [#allocation6], 28672  }
  0x3b   :  { %1197 = vsyncadd [#allocation6], 4294938624 }
  0x3c   :  { %1198 = dma.done.wait [#allocation9], 4096  }
  0x3d   :  { %1199 = vsyncadd [#allocation9], 4294963200  ;;  %v138_v0 = vld [vmem:[#allocation5 + $0xf8] sm:$0xff]  ;;  %v137_v1 = vld [vmem:[#allocation5 + $0xf0] sm:$0xff]  ;;  %vm1213_vm0 = vmmov 0   ;;  %vm771_vm1 = vcmask 1041408  }
  0x3e   :  { %v136_v2 = vld [vmem:[#allocation5 + $0xe8] sm:$0xff]  ;;  %344 = vmatprep.subr.mxu0 %v138_v0  ;;  %v202_v3 = vld [vmem:[#allocation5 + $0x2f8] sm:$0xff]  ;;  %v135_v4 = vld [vmem:[#allocation5 + $0xe0] sm:$0xff]  ;;  %s1214_s12 = smov [#allocation11]  }
  0x3f   :  { %v201_v5 = vld [vmem:[#allocation5 + $0x2f0] sm:$0xff]  ;;  %345 = vmatpush1.msra.mxu0 %v137_v1  ;;  %415 = vmatprep.subr.mxu1 %v202_v3  ;;  %v134_v6 = vld [vmem:[#allocation5 + $0xd8] sm:$0xff]  ;;  %v200_v7 = vld [vmem:[#allocation5 + $0x2e8] sm:$0xff]  ;;  %s900_s13 = sshll.u32 %s1214_s12, 4  ;;  %s901_s13 = int_to_ptr.vmem [resolvable:$true] %s900_s13 }
  0x40   :  { %346 = vmatprep.subr.mxu0 %v136_v2  ;;  %416 = vmatpush1.msra.mxu1 %v201_v5  ;;  %v133_v8 = vld [vmem:[#allocation5 + $0xd0] sm:$0xff]  ;;  %v199_v9 = vld [vmem:[#allocation5 + $0x2e0] sm:$0xff]  ;;  %v198_v10 = vld [vmem:[#allocation5 + $0x2d8] sm:$0xff]  ;;  %p1179_p12 = scmp.lt.s32.totalorder %s901_s13, %s901_s13 }
  0x41   :  { %347 = vmatpush1.msra.mxu0 %v135_v4  ;;  %417 = vmatprep.subr.mxu1 %v200_v7  ;;  %v132_v11 = vld [vmem:[#allocation5 + $0xc8] sm:$0xff]  ;;  %v197_v12 = vld [vmem:[#allocation5 + $0x2d0] sm:$0xff]  ;;  %v131_v13 = vld [vmem:[#allocation5 + $0xc0] sm:$0xff] }
  0x42   :  { %348 = vmatprep.subr.mxu0 %v134_v6  ;;  %418 = vmatpush1.msra.mxu1 %v199_v9  ;;  %v196_v14 = vld [vmem:[#allocation5 + $0x2c8] sm:$0xff]  ;;  %v130_v15 = vld [vmem:[#allocation5 + $0xb8] sm:$0xff]  ;;  %v195_v16 = vld [vmem:[#allocation5 + $0x2c0] sm:$0xff] }
  0x43   :  { %349 = vmatpush1.msra.mxu0 %v133_v8  ;;  %419 = vmatprep.subr.mxu1 %v198_v10  ;;  %v129_v17 = vld [vmem:[#allocation5 + $0xb0] sm:$0xff]  ;;  %v194_v18 = vld [vmem:[#allocation5 + $0x2b8] sm:$0xff]  ;;  %v128_v19 = vld [vmem:[#allocation5 + $0xa8] sm:$0xff] }
  0x44   :  { %350 = vmatprep.subr.mxu0 %v132_v11  ;;  %420 = vmatpush1.msra.mxu1 %v197_v12  ;;  %v193_v20 = vld [vmem:[#allocation5 + $0x2b0] sm:$0xff]  ;;  %v127_v21 = vld [vmem:[#allocation5 + $0xa0] sm:$0xff]  ;;  %v192_v22 = vld [vmem:[#allocation5 + $0x2a8] sm:$0xff] }
  0x45   :  { %351 = vmatpush1.msra.mxu0 %v131_v13  ;;  %421 = vmatprep.subr.mxu1 %v196_v14  ;;  %v126_v23 = vld [vmem:[#allocation5 + $0x98] sm:$0xff]  ;;  %v191_v24 = vld [vmem:[#allocation5 + $0x2a0] sm:$0xff]  ;;  %v125_v25 = vld [vmem:[#allocation5 + $0x90] sm:$0xff] }
  0x46   :  { %352 = vmatprep.subr.mxu0 %v130_v15  ;;  %422 = vmatpush1.msra.mxu1 %v195_v16  ;;  %v190_v26 = vld [vmem:[#allocation5 + $0x298] sm:$0xff]  ;;  %v124_v27 = vld [vmem:[#allocation5 + $0x88] sm:$0xff]  ;;  %v189_v28 = vld [vmem:[#allocation5 + $0x290] sm:$0xff] }
  0x47   :  { %353 = vmatpush1.msra.mxu0 %v129_v17  ;;  %423 = vmatprep.subr.mxu1 %v194_v18  ;;  %v123_v29 = vld [vmem:[#allocation5 + $0x80] sm:$0xff]  ;;  %v188_v30 = vld [vmem:[#allocation5 + $0x288] sm:$0xff]  ;;  %v122_v31 = vld [vmem:[#allocation5 + $0x78] sm:$0xff] }
  0x48   :  { %354 = vmatprep.subr.mxu0 %v128_v19  ;;  %424 = vmatpush1.msra.mxu1 %v193_v20  ;;  %v187_v32 = vld [vmem:[#allocation5 + $0x280] sm:$0xff]  ;;  %v121_v33 = vld [vmem:[#allocation5 + $0x70] sm:$0xff]  ;;  %v186_v34 = vld [vmem:[#allocation5 + $0x278] sm:$0xff] }
  0x49   :  { %355 = vmatpush1.msra.mxu0 %v127_v21  ;;  %425 = vmatprep.subr.mxu1 %v192_v22  ;;  %v120_v35 = vld [vmem:[#allocation5 + $0x68] sm:$0xff]  ;;  %v185_v36 = vld [vmem:[#allocation5 + $0x270] sm:$0xff]  ;;  %v119_v37 = vld [vmem:[#allocation5 + $0x60] sm:$0xff] }
  0x4a   :  { %356 = vmatprep.subr.mxu0 %v126_v23  ;;  %426 = vmatpush1.msra.mxu1 %v191_v24  ;;  %v184_v38 = vld [vmem:[#allocation5 + $0x268] sm:$0xff]  ;;  %v118_v39 = vld [vmem:[#allocation5 + $0x58] sm:$0xff]  ;;  %v183_v40 = vld [vmem:[#allocation5 + $0x260] sm:$0xff] }
  0x4b   :  { %357 = vmatpush1.msra.mxu0 %v125_v25  ;;  %427 = vmatprep.subr.mxu1 %v190_v26  ;;  %v117_v41 = vld [vmem:[#allocation5 + $0x50] sm:$0xff]  ;;  %v182_v42 = vld [vmem:[#allocation5 + $0x258] sm:$0xff]  ;;  %v116_v43 = vld [vmem:[#allocation5 + $0x48] sm:$0xff] }
  0x4c   :  { %358 = vmatprep.subr.mxu0 %v124_v27  ;;  %428 = vmatpush1.msra.mxu1 %v189_v28  ;;  %v181_v44 = vld [vmem:[#allocation5 + $0x250] sm:$0xff]  ;;  %v115_v45 = vld [vmem:[#allocation5 + $0x40] sm:$0xff]  ;;  %v180_v46 = vld [vmem:[#allocation5 + $0x248] sm:$0xff]  ;;  %v301_v27 = vlaneseq  ;;  %v1211_v28 = vmov 1983009808  }
  0x4d   :  { %359 = vmatpush1.msra.mxu0 %v123_v29  ;;  %429 = vmatprep.subr.mxu1 %v188_v30  ;;  %v114_v47 = vld [vmem:[#allocation5 + $0x38] sm:$0xff]  ;;  %v179_v48 = vld [vmem:[#allocation5 + $0x240] sm:$0xff]  ;;  %v113_v49 = vld [vmem:[#allocation5 + $0x30] sm:$0xff]  ;;  %v315_v29 = vunpack.c.l.s4 %v1211_v28 }
  0x4e   :  { %360 = vmatprep.subr.mxu0 %v122_v31  ;;  %430 = vmatpush1.msra.mxu1 %v187_v32  ;;  %v178_v50 = vld [vmem:[#allocation5 + $0x238] sm:$0xff]  ;;  %v112_v51 = vld [vmem:[#allocation5 + $0x28] sm:$0xff]  ;;  %v177_v52 = vld [vmem:[#allocation5 + $0x230] sm:$0xff] }
  0x4f   :  { %361 = vmatpush1.msra.mxu0 %v121_v33  ;;  %431 = vmatprep.subr.mxu1 %v186_v34  ;;  %v111_v53 = vld [vmem:[#allocation5 + $0x20] sm:$0xff]  ;;  %v176_v54 = vld [vmem:[#allocation5 + $0x228] sm:$0xff]  ;;  %v110_v55 = vld [vmem:[#allocation5 + $0x18] sm:$0xff] }
  0x50   :  { %362 = vmatprep.subr.mxu0 %v120_v35  ;;  %432 = vmatpush1.msra.mxu1 %v185_v36  ;;  %v175_v56 = vld [vmem:[#allocation5 + $0x220] sm:$0xff]  ;;  %v109_v57 = vld [vmem:[#allocation5 + $0x10] sm:$0xff]  ;;  %v174_v58 = vld [vmem:[#allocation5 + $0x218] sm:$0xff] }
  0x51   :  { %363 = vmatpush1.msra.mxu0 %v119_v37  ;;  %433 = vmatprep.subr.mxu1 %v184_v38  ;;  %v108_v59 = vld [vmem:[#allocation5 + $0x8] sm:$0xff]  ;;  %v173_v60 = vld [vmem:[#allocation5 + $0x210] sm:$0xff]  ;;  %v107_v61 = vld [vmem:[#allocation5] sm:$0xff]  ;;  %v1299_v38 = vshrl.u32 %v301_v27, 7 }
  0x52   :  { %364 = vmatprep.subr.mxu0 %v118_v39  ;;  %434 = vmatpush1.msra.mxu1 %v183_v40  ;;  %v172_v62 = vld [vmem:[#allocation5 + $0x208] sm:$0xff]  ;;  %v170_v63 = vld [vmem:[#allocation5 + $0x1f8] sm:$0xff]  ;;  %v171_v0 = vld [vmem:[#allocation5 + $0x200] sm:$0xff]  ;;  %v316_v39 = vunpack.c.0.s8 %v315_v29 }
  0x53   :  { %365 = vmatpush1.msra.mxu0 %v117_v41  ;;  %435 = vmatprep.subr.mxu1 %v182_v42  ;;  %v169_v1 = vld [vmem:[#allocation5 + $0x1f0] sm:$0xff]  ;;  %v234_v2 = vld [vmem:[#allocation5 + $0x3f8] sm:$0xff]  ;;  %v168_v3 = vld [vmem:[#allocation5 + $0x1e8] sm:$0xff] }
  0x54   :  { %366 = vmatprep.subr.mxu0 %v116_v43  ;;  %436 = vmatpush1.msra.mxu1 %v181_v44  ;;  %v233_v4 = vld [vmem:[#allocation5 + $0x3f0] sm:$0xff]  ;;  %v167_v5 = vld [vmem:[#allocation5 + $0x1e0] sm:$0xff]  ;;  %v232_v6 = vld [vmem:[#allocation5 + $0x3e8] sm:$0xff] }
  0x55   :  { %367 = vmatpush1.msra.mxu0 %v115_v45  ;;  %437 = vmatprep.subr.mxu1 %v180_v46  ;;  %v166_v7 = vld [vmem:[#allocation5 + $0x1d8] sm:$0xff]  ;;  %v231_v8 = vld [vmem:[#allocation5 + $0x3e0] sm:$0xff]  ;;  %v165_v9 = vld [vmem:[#allocation5 + $0x1d0] sm:$0xff] }
  0x56   :  { %368 = vmatprep.subr.mxu0 %v114_v47  ;;  %438 = vmatpush1.msra.mxu1 %v179_v48  ;;  %v230_v10 = vld [vmem:[#allocation5 + $0x3d8] sm:$0xff]  ;;  %v164_v11 = vld [vmem:[#allocation5 + $0x1c8] sm:$0xff]  ;;  %v229_v12 = vld [vmem:[#allocation5 + $0x3d0] sm:$0xff]  ;;  %v319_v48 = vsub.s32 %v316_v39, %v1299_v38 }
  0x57   :  { %369 = vmatpush1.msra.mxu0 %v113_v49  ;;  %439 = vmatprep.subr.mxu1 %v178_v50  ;;  %v163_v13 = vld [vmem:[#allocation5 + $0x1c0] sm:$0xff]  ;;  %v228_v14 = vld [vmem:[#allocation5 + $0x3c8] sm:$0xff]  ;;  %v162_v15 = vld [vmem:[#allocation5 + $0x1b8] sm:$0xff] }
  0x58   :  { %370 = vmatprep.subr.mxu0 %v112_v51  ;;  %440 = vmatpush1.msra.mxu1 %v177_v52  ;;  %v227_v16 = vld [vmem:[#allocation5 + $0x3c0] sm:$0xff]  ;;  %v161_v17 = vld [vmem:[#allocation5 + $0x1b0] sm:$0xff]  ;;  %v226_v18 = vld [vmem:[#allocation5 + $0x3b8] sm:$0xff] }
  0x59   :  { %371 = vmatpush1.msra.mxu0 %v111_v53  ;;  %441 = vmatprep.subr.mxu1 %v176_v54  ;;  %v160_v19 = vld [vmem:[#allocation5 + $0x1a8] sm:$0xff]  ;;  %v225_v20 = vld [vmem:[#allocation5 + $0x3b0] sm:$0xff]  ;;  %v159_v21 = vld [vmem:[#allocation5 + $0x1a0] sm:$0xff] }
  0x5a   :  { %372 = vmatprep.subr.mxu0 %v110_v55  ;;  %442 = vmatpush1.msra.mxu1 %v175_v56  ;;  %v224_v22 = vld [vmem:[#allocation5 + $0x3a8] sm:$0xff]  ;;  %v158_v23 = vld [vmem:[#allocation5 + $0x198] sm:$0xff]  ;;  %v223_v24 = vld [vmem:[#allocation5 + $0x3a0] sm:$0xff] }
  0x5b   :  { %373 = vmatpush1.msra.mxu0 %v109_v57  ;;  %443 = vmatprep.subr.mxu1 %v174_v58  ;;  %v157_v25 = vld [vmem:[#allocation5 + $0x190] sm:$0xff]  ;;  %v222_v26 = vld [vmem:[#allocation5 + $0x398] sm:$0xff]  ;;  %v156_v30 = vld [vmem:[#allocation5 + $0x188] sm:$0xff] }
  0x5c   :  { %374 = vmatprep.subr.mxu0 %v108_v59  ;;  %444 = vmatpush1.msra.mxu1 %v173_v60  ;;  %v221_v31 = vld [vmem:[#allocation5 + $0x390] sm:$0xff]  ;;  %v155_v32 = vld [vmem:[#allocation5 + $0x180] sm:$0xff]  ;;  %v220_v33 = vld [vmem:[#allocation5 + $0x388] sm:$0xff] }
  0x5d   :  { %375 = vmatpush1.msra.mxu0 %v107_v61  ;;  %445 = vmatprep.subr.mxu1 %v172_v62  ;;  %v154_v34 = vld [vmem:[#allocation5 + $0x178] sm:$0xff]  ;;  %v219_v35 = vld [vmem:[#allocation5 + $0x380] sm:$0xff]  ;;  %v153_v36 = vld [vmem:[#allocation5 + $0x170] sm:$0xff] }
  0x5e   :  { %376 = vmatprep.subr.mxu0 %v170_v63  ;;  %446 = vmatpush1.msra.mxu1 %v171_v0  ;;  %v218_v37 = vld [vmem:[#allocation5 + $0x378] sm:$0xff]  ;;  %v152_v40 = vld [vmem:[#allocation5 + $0x168] sm:$0xff]  ;;  %v217_v41 = vld [vmem:[#allocation5 + $0x370] sm:$0xff] }
  0x5f   :  { %377 = vmatpush2.msra.mxu0 %v169_v1  ;;  %447 = vmatprep.subr.mxu1 %v234_v2  ;;  %v151_v42 = vld [vmem:[#allocation5 + $0x160] sm:$0xff]  ;;  %v216_v43 = vld [vmem:[#allocation5 + $0x368] sm:$0xff]  ;;  %v150_v44 = vld [vmem:[#allocation5 + $0x158] sm:$0xff] }
  0x60   :  { %378 = vmatprep.subr.mxu0 %v168_v3  ;;  %448 = vmatpush2.msra.mxu1 %v233_v4  ;;  %v215_v45 = vld [vmem:[#allocation5 + $0x360] sm:$0xff]  ;;  %v149_v46 = vld [vmem:[#allocation5 + $0x150] sm:$0xff]  ;;  %v214_v47 = vld [vmem:[#allocation5 + $0x358] sm:$0xff] }
  0x61   :  { %379 = vmatpush2.msra.mxu0 %v167_v5  ;;  %449 = vmatprep.subr.mxu1 %v232_v6  ;;  %v148_v49 = vld [vmem:[#allocation5 + $0x148] sm:$0xff]  ;;  %v213_v50 = vld [vmem:[#allocation5 + $0x350] sm:$0xff]  ;;  %v147_v52 = vld [vmem:[#allocation5 + $0x140] sm:$0xff] }
  0x62   :  { %380 = vmatprep.subr.mxu0 %v166_v7  ;;  %450 = vmatpush2.msra.mxu1 %v231_v8  ;;  %v105_v51 = vld [vmem:[#allocation2] sm:$0xff]  ;;  %v212_v53 = vld [vmem:[#allocation5 + $0x348] sm:$0xff]  ;;  %v211_v55 = vld [vmem:[#allocation5 + $0x340] sm:$0xff] }
  0x63   :  { %381 = vmatpush2.msra.mxu0 %v165_v9  ;;  %451 = vmatprep.subr.mxu1 %v230_v10  ;;  %v146_v54 = vld [vmem:[#allocation5 + $0x138] sm:$0xff]  ;;  %v145_v56 = vld [vmem:[#allocation5 + $0x130] sm:$0xff]  ;;  %v320_v58 = vrot.slane %v105_v51, %v319_v48  ;;  %v313_v59 = vcombine.high %v105_v51, %v105_v51  ;;  %v144_v60 = vld [vmem:[#allocation5 + $0x128] sm:$0xff] }
  0x64   :  { %382 = vmatprep.subr.mxu0 %v164_v11  ;;  %452 = vmatpush2.msra.mxu1 %v229_v12  ;;  %v210_v57 = vld [vmem:[#allocation5 + $0x338] sm:$0xff]  ;;  %v209_v61 = vld [vmem:[#allocation5 + $0x330] sm:$0xff]  ;;  %v143_v62 = vld [vmem:[#allocation5 + $0x120] sm:$0xff] }
  0x65   :  { %383 = vmatpush2.msra.mxu0 %v163_v13  ;;  %453 = vmatprep.subr.mxu1 %v228_v14  ;;  %v208_v63 = vld [vmem:[#allocation5 + $0x328] sm:$0xff]  ;;  %v142_v0 = vld [vmem:[#allocation5 + $0x118] sm:$0xff]  ;;  %v207_v1 = vld [vmem:[#allocation5 + $0x320] sm:$0xff]  ;;  %v328_v4 = vcombine.high %v320_v58, %v320_v58  ;;  %v327_v5 = vrot.slane %v313_v59, %v319_v48 }
  0x66   :  { %384 = vmatprep.subr.mxu0 %v162_v15  ;;  %454 = vmatpush2.msra.mxu1 %v227_v16  ;;  %v141_v2 = vld [vmem:[#allocation5 + $0x110] sm:$0xff]  ;;  %v206_v3 = vld [vmem:[#allocation5 + $0x318] sm:$0xff]  ;;  %v140_v6 = vld [vmem:[#allocation5 + $0x108] sm:$0xff] }
  0x67   :  { %385 = vmatpush2.msra.mxu0 %v161_v17  ;;  %455 = vmatprep.subr.mxu1 %v226_v18  ;;  %v139_v7 = vld [vmem:[#allocation5 + $0x100] sm:$0xff]  ;;  %v205_v8 = vld [vmem:[#allocation5 + $0x310] sm:$0xff]  ;;  %v204_v9 = vld [vmem:[#allocation5 + $0x308] sm:$0xff]  ;;  %v329_v12 = vcombine.high %v327_v5, %v327_v5 }
  0x68   :  { %386 = vmatprep.subr.mxu0 %v160_v19  ;;  %456 = vmatpush2.msra.mxu1 %v225_v20  ;;  %v266_v10 = vld [vmem:[#allocation5 + $0x4f8] sm:$0xff]  ;;  %v203_v11 = vld [vmem:[#allocation5 + $0x300] sm:$0xff]  ;;  %v265_v13 = vld [vmem:[#allocation5 + $0x4f0] sm:$0xff] }
  0x69   :  { %387 = vmatpush2.msra.mxu0 %v159_v21  ;;  %457 = vmatprep.subr.mxu1 %v224_v22  ;;  %v1302_v14 = vld.sshfl [vmem:[#allocation2 + $0x8] sm:$0x33 pattern:$0x76325410]  ;;  %v264_v15 = vld [vmem:[#allocation5 + $0x4e8] sm:$0xff]  ;;  %v263_v17 = vld [vmem:[#allocation5 + $0x4e0] sm:$0xff] }
  0x6a   :  { %388 = vmatprep.subr.mxu0 %v158_v23  ;;  %458 = vmatpush2.msra.mxu1 %v223_v24  ;;  %v337_v16 = vcombine.high %v1302_v14, %v1302_v14  ;;  %v262_v18 = vld [vmem:[#allocation5 + $0x4d8] sm:$0xff]  ;;  %v261_v19 = vld [vmem:[#allocation5 + $0x4d0] sm:$0xff]  ;;  %v260_v20 = vld [vmem:[#allocation5 + $0x4c8] sm:$0xff] }
  0x6b   :  { %389 = vmatpush2.msra.mxu0 %v157_v25  ;;  %459 = vmatprep.subr.mxu1 %v222_v26  ;;  %v259_v21 = vld [vmem:[#allocation5 + $0x4c0] sm:$0xff]  ;;  %v258_v22 = vld [vmem:[#allocation5 + $0x4b8] sm:$0xff]  ;;  %v257_v23 = vld [vmem:[#allocation5 + $0x4b0] sm:$0xff] }
  0x6c   :  { %390 = vmatprep.subr.mxu0 %v156_v30  ;;  %460 = vmatpush2.msra.mxu1 %v221_v31  ;;  %v256_v24 = vld [vmem:[#allocation5 + $0x4a8] sm:$0xff]  ;;  %v255_v25 = vld [vmem:[#allocation5 + $0x4a0] sm:$0xff]  ;;  %v254_v26 = vld [vmem:[#allocation5 + $0x498] sm:$0xff] }
  0x6d   :  { %391 = vmatpush2.msra.mxu0 %v155_v32  ;;  %461 = vmatprep.subr.mxu1 %v220_v33  ;;  %v253_v27 = vld [vmem:[#allocation5 + $0x490] sm:$0xff]  ;;  %v252_v28 = vld [vmem:[#allocation5 + $0x488] sm:$0xff]  ;;  %v251_v29 = vld [vmem:[#allocation5 + $0x480] sm:$0xff] }
  0x6e   :  { %392 = vmatprep.subr.mxu0 %v154_v34  ;;  %462 = vmatpush2.msra.mxu1 %v219_v35  ;;  %v250_v30 = vld [vmem:[#allocation5 + $0x478] sm:$0xff]  ;;  %v249_v31 = vld [vmem:[#allocation5 + $0x470] sm:$0xff]  ;;  %v248_v32 = vld [vmem:[#allocation5 + $0x468] sm:$0xff] }
  0x6f   :  { %393 = vmatpush2.msra.mxu0 %v153_v36  ;;  %463 = vmatprep.subr.mxu1 %v218_v37  ;;  %v247_v33 = vld [vmem:[#allocation5 + $0x460] sm:$0xff]  ;;  %v246_v34 = vld [vmem:[#allocation5 + $0x458] sm:$0xff]  ;;  %v245_v35 = vld [vmem:[#allocation5 + $0x450] sm:$0xff] }
  0x70   :  { %394 = vmatprep.subr.mxu0 %v152_v40  ;;  %464 = vmatpush2.msra.mxu1 %v217_v41  ;;  %v244_v36 = vld [vmem:[#allocation5 + $0x448] sm:$0xff]  ;;  %v243_v37 = vld [vmem:[#allocation5 + $0x440] sm:$0xff]  ;;  %v242_v39 = vld [vmem:[#allocation5 + $0x438] sm:$0xff] }
  0x71   :  { %395 = vmatpush2.msra.mxu0 %v151_v42  ;;  %465 = vmatprep.subr.mxu1 %v216_v43  ;;  %v241_v40 = vld [vmem:[#allocation5 + $0x430] sm:$0xff]  ;;  %v240_v41 = vld [vmem:[#allocation5 + $0x428] sm:$0xff]  ;;  %v239_v42 = vld [vmem:[#allocation5 + $0x420] sm:$0xff] }
  0x72   :  { %396 = vmatprep.subr.mxu0 %v150_v44  ;;  %466 = vmatpush2.msra.mxu1 %v215_v45  ;;  %v238_v43 = vld [vmem:[#allocation5 + $0x418] sm:$0xff]  ;;  %v237_v44 = vld [vmem:[#allocation5 + $0x410] sm:$0xff]  ;;  %v236_v45 = vld [vmem:[#allocation5 + $0x408] sm:$0xff] }
  0x73   :  { %397 = vmatpush2.msra.mxu0 %v149_v46  ;;  %467 = vmatprep.subr.mxu1 %v214_v47  ;;  %v235_v46 = vld [vmem:[#allocation5 + $0x400] sm:$0xff]  ;;  %v298_v47 = vld [vmem:[#allocation5 + $0x5f8] sm:$0xff]  ;;  %v297_v48 = vld [vmem:[#allocation5 + $0x5f0] sm:$0xff] }
  0x74   :  { %398 = vmatprep.subr.mxu0 %v148_v49  ;;  %468 = vmatpush2.msra.mxu1 %v213_v50  ;;  %v296_v49 = vld [vmem:[#allocation5 + $0x5e8] sm:$0xff]  ;;  %v295_v50 = vld [vmem:[#allocation5 + $0x5e0] sm:$0xff]  ;;  %v294_v51 = vld [vmem:[#allocation5 + $0x5d8] sm:$0xff] }
  0x75   :  { %399 = vmatpush2.msra.mxu0 %v147_v52  ;;  %469 = vmatprep.subr.mxu1 %v212_v53  ;;  %v293_v52 = vld [vmem:[#allocation5 + $0x5d0] sm:$0xff]  ;;  %v292_v53 = vld [vmem:[#allocation5 + $0x5c8] sm:$0xff]  ;;  %v286_v59 = vld [vmem:[#allocation5 + $0x598] sm:$0xff] }
  0x76   :  { %400 = vmatprep.subr.mxu0 %v146_v54  ;;  %470 = vmatpush2.msra.mxu1 %v211_v55  ;;  %v291_v54 = vld [vmem:[#allocation5 + $0x5c0] sm:$0xff]  ;;  %v290_v55 = vld [vmem:[#allocation5 + $0x5b8] sm:$0xff] }
  0x77   :  { %401 = vmatpush2.msra.mxu0 %v145_v56  ;;  %471 = vmatprep.subr.mxu1 %v210_v57  ;;  %v289_v56 = vld [vmem:[#allocation5 + $0x5b0] sm:$0xff]  ;;  %v288_v57 = vld [vmem:[#allocation5 + $0x5a8] sm:$0xff] }
  0x78   :  { %402 = vmatprep.subr.mxu0 %v144_v60  ;;  %472 = vmatpush2.msra.mxu1 %v209_v61  ;;  %v285_v60 = vld [vmem:[#allocation5 + $0x590] sm:$0xff]  ;;  %v284_v61 = vld [vmem:[#allocation5 + $0x588] sm:$0xff] }
  0x79   :  { %403 = vmatpush2.msra.mxu0 %v143_v62  ;;  %473 = vmatprep.subr.mxu1 %v208_v63  ;;  %v283_v62 = vld [vmem:[#allocation5 + $0x580] sm:$0xff]  ;;  %v282_v63 = vld [vmem:[#allocation5 + $0x578] sm:$0xff] }
  0x7a   :  { %404 = vmatprep.subr.mxu0 %v142_v0  ;;  %474 = vmatpush2.msra.mxu1 %v207_v1  ;;  %v281_v0 = vld [vmem:[#allocation5 + $0x570] sm:$0xff]  ;;  %v280_v1 = vld [vmem:[#allocation5 + $0x568] sm:$0xff] }
  0x7b   :  { %405 = vmatpush2.msra.mxu0 %v141_v2  ;;  %475 = vmatprep.subr.mxu1 %v206_v3  ;;  %v279_v2 = vld [vmem:[#allocation5 + $0x560] sm:$0xff]  ;;  %v278_v3 = vld [vmem:[#allocation5 + $0x558] sm:$0xff] }
  0x7c   :  { %406 = vmatprep.subr.mxu0 %v140_v6  ;;  %408 = vmatprep.mubr.f32.mxu0 %v328_v4  ;;  %v277_v4 = vld [vmem:[#allocation5 + $0x550] sm:$0xff]  ;;  %v275_v6 = vld [vmem:[#allocation5 + $0x540] sm:$0xff] }
  0x7d   :  { %407 = vmatpush2.msra.mxu0 %v139_v7  ;;  %476 = vmatpush2.msra.mxu1 %v205_v8  ;;  %v274_v7 = vld [vmem:[#allocation5 + $0x538] sm:$0xff]  ;;  %v273_v8 = vld [vmem:[#allocation5 + $0x530] sm:$0xff] }
  0x7e   :  { %409 = vmatmul.mubr.f32.vlgmr.msra.gmra.mxu0 %v320_v58  ;;  %477 = vmatprep.subr.mxu1 %v204_v9  ;;  %v287_v58 = vld [vmem:[#allocation5 + $0x5a0] sm:$0xff]  ;;  %v272_v9 = vld [vmem:[#allocation5 + $0x528] sm:$0xff] }
  0x7f   :  { %486 = vmatprep.subr.mxu0 %v266_v10  ;;  %478 = vmatpush2.msra.mxu1 %v203_v11  ;;  %v271_v10 = vld [vmem:[#allocation5 + $0x520] sm:$0xff]  ;;  %v270_v11 = vld [vmem:[#allocation5 + $0x518] sm:$0xff] }
  0x80   :  { %479 = vmatprep.mubr.f32.mxu1 %v329_v12  ;;  %487 = vmatpush1.msra.mxu0 %v265_v13  ;;  %v269_v12 = vld [vmem:[#allocation5 + $0x510] sm:$0xff]  ;;  %v268_v13 = vld [vmem:[#allocation5 + $0x508] sm:$0xff] }
  0x81   :  { %480 = vmatmul.mubr.f32.vlgmr.msra.gmra.mxu1 %v327_v5  ;;  %488 = vmatprep.subr.mxu0 %v264_v15  ;;  %v276_v5 = vld [vmem:[#allocation5 + $0x548] sm:$0xff]  ;;  %v267_v15 = vld [vmem:[#allocation5 + $0x500] sm:$0xff] }
  0x82   :  { %489 = vmatpush1.msra.mxu0 %v263_v17  ;;  %550 = vmatprep.mubr.f32.mxu0 %v337_v16  ;;  %v588_v16 = vld [vmem:[#allocation7 + $0xf8] sm:$0xff] }
  0x83   :  { %490 = vmatprep.subr.mxu0 %v262_v18  ;;  %v572_v17 = vld [vmem:[#allocation7 + $0x78] sm:$0xff]  ;;  %v587_v18 = vld [vmem:[#allocation7 + $0xf0] sm:$0xff]  ;;  %917 = vmatprep.subr.mxu1 %v588_v16  ;;  %v676_v16 = vld [vmem:[#allocation8 + $0x8] sm:$0xff] }
  0x84   :  { %491 = vmatpush1.msra.mxu0 %v261_v19  ;;  %v571_v19 = vld [vmem:[#allocation7 + $0x70] sm:$0xff]  ;;  %918 = vmatpush3.msra.mxu1 %v572_v17  ;;  %v675_v17 = vld [vmem:[#allocation8] sm:$0xff] }
  0x85   :  { %492 = vmatprep.subr.mxu0 %v260_v20  ;;  %v586_v20 = vld [vmem:[#allocation7 + $0xe8] sm:$0xff]  ;;  %919 = vmatprep.subr.mxu1 %v587_v18 }
  0x86   :  { %493 = vmatpush1.msra.mxu0 %v259_v21  ;;  %v570_v21 = vld [vmem:[#allocation7 + $0x68] sm:$0xff]  ;;  %920 = vmatpush3.msra.mxu1 %v571_v19  ;;  %v912_v19 = vld [vmem:[%s1370_s4] ss:$0 sm:$0xff] }
  0x87   :  { %494 = vmatprep.subr.mxu0 %v258_v22  ;;  %v585_v22 = vld [vmem:[#allocation7 + $0xe0] sm:$0xff]  ;;  %921 = vmatprep.subr.mxu1 %v586_v20 }
  0x88   :  { %495 = vmatpush1.msra.mxu0 %v257_v23  ;;  %v569_v23 = vld [vmem:[#allocation7 + $0x60] sm:$0xff]  ;;  %922 = vmatpush3.msra.mxu1 %v570_v21 }
  0x89   :  { %496 = vmatprep.subr.mxu0 %v256_v24  ;;  %v584_v24 = vld [vmem:[#allocation7 + $0xd8] sm:$0xff]  ;;  %923 = vmatprep.subr.mxu1 %v585_v22 }
  0x8a   :  { %497 = vmatpush1.msra.mxu0 %v255_v25  ;;  %v568_v25 = vld [vmem:[#allocation7 + $0x58] sm:$0xff]  ;;  %924 = vmatpush3.msra.mxu1 %v569_v23 }
  0x8b   :  { %498 = vmatprep.subr.mxu0 %v254_v26  ;;  %v583_v26 = vld [vmem:[#allocation7 + $0xd0] sm:$0xff]  ;;  %925 = vmatprep.subr.mxu1 %v584_v24 }
  0x8c   :  { %499 = vmatpush1.msra.mxu0 %v253_v27  ;;  %926 = vmatpush3.msra.mxu1 %v568_v25  ;;  %v582_v27 = vld [vmem:[#allocation7 + $0xc8] sm:$0xff] }
  0x8d   :  { %500 = vmatprep.subr.mxu0 %v252_v28  ;;  %927 = vmatprep.subr.mxu1 %v583_v26  ;;  %v566_v28 = vld [vmem:[#allocation7 + $0x48] sm:$0xff] }
  0x8e   :  { %501 = vmatpush1.msra.mxu0 %v251_v29  ;;  %v581_v29 = vld [vmem:[#allocation7 + $0xc0] sm:$0xff] }
  0x8f   :  { %502 = vmatprep.subr.mxu0 %v250_v30  ;;  %v565_v30 = vld [vmem:[#allocation7 + $0x40] sm:$0xff] }
  0x90   :  { %503 = vmatpush1.msra.mxu0 %v249_v31  ;;  %v580_v31 = vld [vmem:[#allocation7 + $0xb8] sm:$0xff] }
  0x91   :  { %504 = vmatprep.subr.mxu0 %v248_v32  ;;  %v564_v32 = vld [vmem:[#allocation7 + $0x38] sm:$0xff] }
  0x92   :  { %505 = vmatpush1.msra.mxu0 %v247_v33  ;;  %v579_v33 = vld [vmem:[#allocation7 + $0xb0] sm:$0xff] }
  0x93   :  { %506 = vmatprep.subr.mxu0 %v246_v34  ;;  %v563_v34 = vld [vmem:[#allocation7 + $0x30] sm:$0xff] }
  0x94   :  { %507 = vmatpush1.msra.mxu0 %v245_v35  ;;  %v578_v35 = vld [vmem:[#allocation7 + $0xa8] sm:$0xff] }
  0x95   :  { %508 = vmatprep.subr.mxu0 %v244_v36  ;;  %v562_v36 = vld [vmem:[#allocation7 + $0x28] sm:$0xff] }
  0x96   :  { %509 = vmatpush1.msra.mxu0 %v243_v37  ;;  %v577_v37 = vld [vmem:[#allocation7 + $0xa0] sm:$0xff] }
  0x97   :  { %510 = vmatprep.subr.mxu0 %v242_v39  ;;  %v561_v39 = vld [vmem:[#allocation7 + $0x20] sm:$0xff] }
  0x98   :  { %511 = vmatpush1.msra.mxu0 %v241_v40  ;;  %v576_v40 = vld [vmem:[#allocation7 + $0x98] sm:$0xff] }
  0x99   :  { %512 = vmatprep.subr.mxu0 %v240_v41  ;;  %v560_v41 = vld [vmem:[#allocation7 + $0x18] sm:$0xff] }
  0x9a   :  { %513 = vmatpush1.msra.mxu0 %v239_v42  ;;  %v575_v42 = vld [vmem:[#allocation7 + $0x90] sm:$0xff] }
  0x9b   :  { %514 = vmatprep.subr.mxu0 %v238_v43  ;;  %v559_v43 = vld [vmem:[#allocation7 + $0x10] sm:$0xff] }
  0x9c   :  { %515 = vmatpush1.msra.mxu0 %v237_v44  ;;  %v574_v44 = vld [vmem:[#allocation7 + $0x88] sm:$0xff] }
  0x9d   :  { %516 = vmatprep.subr.mxu0 %v236_v45  ;;  %v558_v45 = vld [vmem:[#allocation7 + $0x8] sm:$0xff] }
  0x9e   :  { %517 = vmatpush1.msra.mxu0 %v235_v46  ;;  %v573_v46 = vld [vmem:[#allocation7 + $0x80] sm:$0xff] }
  0x9f   :  { %518 = vmatprep.subr.mxu0 %v298_v47  ;;  %v557_v47 = vld [vmem:[#allocation7] sm:$0xff] }
  0xa0   :  { %519 = vmatpush2.msra.mxu0 %v297_v48  ;;  %v307_v48 = vsub.s32 1, %v1299_v38 }
  0xa1   :  { %520 = vmatprep.subr.mxu0 %v296_v49  ;;  %v299_v49 = vld [vmem:[%s1368_s2] sm:$0x3] }
  0xa2   :  { %521 = vmatpush2.msra.mxu0 %v295_v50  ;;  %v303_v50 = vsub.s32 0, %v1299_v38  ;;  %v690_v38 = vld [vmem:[#allocation8 + $0x78] sm:$0xff] }
  0xa3   :  { %522 = vmatprep.subr.mxu0 %v294_v51 }
  0xa4   :  { %523 = vmatpush2.msra.mxu0 %v293_v52  ;;  %v308_v52 = vrot.slane %v299_v49, %v307_v48  ;;  %v810_v48 = vld [vmem:[#allocation10 + $0x50] sm:$0xff] }
  0xa5   :  { %524 = vmatprep.subr.mxu0 %v292_v53  ;;  %v304_v53 = vrot.slane %v299_v49, %v303_v50  ;;  %v809_v49 = vld [vmem:[#allocation10 + $0x48] sm:$0xff]  ;;  %v808_v50 = vld [vmem:[#allocation10 + $0x40] sm:$0xff] }
  0xa6   :  { %525 = vmatpush2.msra.mxu0 %v291_v54 }
  0xa7   :  { %526 = vmatprep.subr.mxu0 %v290_v55 }
  0xa8   :  { %527 = vmatpush2.msra.mxu0 %v289_v56 }
  0xa9   :  { %528 = vmatprep.subr.mxu0 %v288_v57 }
  0xaa   :  { %529 = vmatpush2.msra.mxu0 %v287_v58 }
  0xab   :  { %530 = vmatprep.subr.mxu0 %v286_v59 }
  0xac   :  { %531 = vmatpush2.msra.mxu0 %v285_v60 }
  0xad   :  { %532 = vmatprep.subr.mxu0 %v284_v61 }
  0xae   :  { %533 = vmatpush2.msra.mxu0 %v283_v62 }
  0xaf   :  { %534 = vmatprep.subr.mxu0 %v282_v63 }
  0xb0   :  { %535 = vmatpush2.msra.mxu0 %v281_v0 }
  0xb1   :  { %536 = vmatprep.subr.mxu0 %v280_v1  ;;  %v1212_v1 = vmov 0.0  }
  0xb2   :  { %537 = vmatpush2.msra.mxu0 %v279_v2  ;;  %v689_v2 = vld [vmem:[#allocation8 + $0x70] sm:$0xff] }
  0xb3   :  { %538 = vmatprep.subr.mxu0 %v278_v3  ;;  %v688_v3 = vld [vmem:[#allocation8 + $0x68] sm:$0xff] }
  0xb4   :  { %539 = vmatpush2.msra.mxu0 %v277_v4  ;;  %v687_v4 = vld [vmem:[#allocation8 + $0x60] sm:$0xff] }
  0xb5   :  { %540 = vmatprep.subr.mxu0 %v276_v5  ;;  %v686_v5 = vld [vmem:[#allocation8 + $0x58] sm:$0xff] }
  0xb6   :  { %541 = vmatpush2.msra.mxu0 %v275_v6  ;;  %v685_v6 = vld [vmem:[#allocation8 + $0x50] sm:$0xff] }
  0xb7   :  { %542 = vmatprep.subr.mxu0 %v274_v7  ;;  %v684_v7 = vld [vmem:[#allocation8 + $0x48] sm:$0xff] }
  0xb8   :  { %543 = vmatpush2.msra.mxu0 %v273_v8  ;;  %v683_v8 = vld [vmem:[#allocation8 + $0x40] sm:$0xff] }
  0xb9   :  { %544 = vmatprep.subr.mxu0 %v272_v9  ;;  %v682_v9 = vld [vmem:[#allocation8 + $0x38] sm:$0xff] }
  0xba   :  { %545 = vmatpush2.msra.mxu0 %v271_v10  ;;  %v681_v10 = vld [vmem:[#allocation8 + $0x30] sm:$0xff] }
  0xbb   :  { %546 = vmatprep.subr.mxu0 %v270_v11  ;;  %v680_v11 = vld [vmem:[#allocation8 + $0x28] sm:$0xff] }
  0xbc   :  { %547 = vmatpush2.msra.mxu0 %v269_v12  ;;  %v679_v12 = vld [vmem:[#allocation8 + $0x20] sm:$0xff] }
  0xbd   :  { %548 = vmatprep.subr.mxu0 %v268_v13  ;;  %v678_v13 = vld [vmem:[#allocation8 + $0x18] sm:$0xff] }
  0xbe   :  { %549 = vmatpush2.msra.mxu0 %v267_v15  ;;  %v677_v15 = vld [vmem:[#allocation8 + $0x10] sm:$0xff] }
  0xbf   :  { %551 = vmatmul.mubr.f32.vlgmr.msra.gmra.mxu0 %v1302_v14  ;;  %v567_v14 = vld [vmem:[#allocation7 + $0x50] sm:$0xff]  ;;  %1021 = vmatprep.subr.mxu0 %v1212_v1 }
  0xc0   :  { %928 = vmatpush3.msra.mxu1 %v567_v14  ;;  %1053 = vmatprep.mubr.msk.f32.mxu0 %vm1213_vm0, %v1212_v1 }
  0xc1   :  { %929 = vmatprep.subr.mxu1 %v582_v27 }
  0xc2   :  { %930 = vmatpush3.msra.mxu1 %v566_v28 }
  0xc3   :  { %931 = vmatprep.subr.mxu1 %v581_v29 }
  0xc4   :  { %932 = vmatpush3.msra.mxu1 %v565_v30 }
  0xc5   :  { %933 = vmatprep.subr.mxu1 %v580_v31  ;;  %v913_v31 = vld [vmem:[%s1372_s6] ss:$0 sm:$0xff] }
  0xc6   :  { %934 = vmatpush3.msra.mxu1 %v564_v32 }
  0xc7   :  { %935 = vmatprep.subr.mxu1 %v579_v33 }
  0xc8   :  { %936 = vmatpush3.msra.mxu1 %v563_v34 }
  0xc9   :  { %937 = vmatprep.subr.mxu1 %v578_v35 }
  0xca   :  { %938 = vmatpush3.msra.mxu1 %v562_v36 }
  0xcb   :  { %939 = vmatprep.subr.mxu1 %v577_v37  ;;  %v815_v37 = vld [vmem:[#allocation10 + $0x78] sm:$0xff] }
  0xcc   :  { %940 = vmatpush3.msra.mxu1 %v561_v39  ;;  %v814_v39 = vld [vmem:[#allocation10 + $0x70] sm:$0xff]  ;;  %1022 = vmatpush3.msra.mxu0 %v815_v37 }
  0xcd   :  { %941 = vmatprep.subr.mxu1 %v576_v40  ;;  %1023 = vmatprep.subr.mxu0 %v1212_v1  ;;  %v813_v40 = vld [vmem:[#allocation10 + $0x68] sm:$0xff] }
  0xce   :  { %942 = vmatpush3.msra.mxu1 %v560_v41  ;;  %1024 = vmatpush3.msra.mxu0 %v814_v39  ;;  %v812_v41 = vld [vmem:[#allocation10 + $0x60] sm:$0xff] }
  0xcf   :  { %943 = vmatprep.subr.mxu1 %v575_v42  ;;  %1025 = vmatprep.subr.mxu0 %v1212_v1 }
  0xd0   :  { %944 = vmatpush3.msra.mxu1 %v559_v43  ;;  %1026 = vmatpush3.msra.mxu0 %v813_v40 }
  0xd1   :  { %945 = vmatprep.subr.mxu1 %v574_v44  ;;  %1027 = vmatprep.subr.mxu0 %v1212_v1 }
  0xd2   :  { %946 = vmatpush3.msra.mxu1 %v558_v45  ;;  %1028 = vmatpush3.msra.mxu0 %v812_v41 }
  0xd3   :  { %947 = vmatprep.subr.mxu1 %v573_v46  ;;  %1029 = vmatprep.subr.mxu0 %v1212_v1 }
  0xd4   :  { %948 = vmatpush3.msra.mxu1 %v557_v47  ;;  %v811_v47 = vld [vmem:[#allocation10 + $0x58] sm:$0xff] }
  0xd5   :  { %986 = vmatprep.subr.mxu1 %v1212_v1  ;;  %1030 = vmatpush3.msra.mxu0 %v811_v47 }
  0xd6   :  { %1031 = vmatprep.subr.mxu0 %v1212_v1 }
  0xd7   :  { %1032 = vmatpush3.msra.mxu0 %v810_v48 }
  0xd8   :  { %1033 = vmatprep.subr.mxu0 %v1212_v1 }
  0xd9   :  { %1034 = vmatpush3.msra.mxu0 %v809_v49 }
  0xda   :  { %1035 = vmatprep.subr.mxu0 %v1212_v1 }
  0xdb   :  { %1036 = vmatpush3.msra.mxu0 %v808_v50 }
  0xdc   :  { %1037 = vmatprep.subr.mxu0 %v1212_v1 }
 0x13e   :  { %v410_v51 = vpop.f32.mrf.mxu0 }
 0x13f   :  { %v411_v57 = vadd.f32 %v410_v51, %v304_v53  ;;  %v807_v51 = vld [vmem:[#allocation10 + $0x38] sm:$0xff]  ;;  %v805_v53 = vld [vmem:[#allocation10 + $0x28] sm:$0xff] }
 0x140   :  { %v412_v54 = vpop.f32.mrf.mxu0  ;;  %1038 = vmatpush3.msra.mxu0 %v807_v51 }
 0x141   :  { %v481_v55 = vpop.f32.mrf.mxu1  ;;  %v413_v56 = vadd.f32 %v412_v54, %v308_v52  ;;  %v806_v52 = vld [vmem:[#allocation10 + $0x30] sm:$0xff]  ;;  %1039 = vmatprep.subr.mxu0 %v1212_v1  ;;  %v804_v54 = vld [vmem:[#allocation10 + $0x20] sm:$0xff] }
 0x142   :  { %v482_v61 = vadd.f32 %v481_v55, %v411_v57  ;;  %1040 = vmatpush3.msra.mxu0 %v806_v52  ;;  %v803_v55 = vld [vmem:[#allocation10 + $0x18] sm:$0xff]  ;;  %v801_v57 = vld [vmem:[#allocation10 + $0x8] sm:$0xff] }
 0x143   :  { %v483_v58 = vpop.f32.mrf.mxu1  ;;  %1041 = vmatprep.subr.mxu0 %v1212_v1 }
 0x144   :  { %v484_v60 = vadd.f32 %v483_v58, %v413_v56  ;;  %1042 = vmatpush3.msra.mxu0 %v805_v53  ;;  %v802_v56 = vld [vmem:[#allocation10 + $0x10] sm:$0xff]  ;;  %v800_v58 = vld [vmem:[#allocation10] sm:$0xff] }
 0x145   :  { %1043 = vmatprep.subr.mxu0 %v1212_v1 }
 0x146   :  { %1044 = vmatpush3.msra.mxu0 %v804_v54 }
 0x147   :  { %1045 = vmatprep.subr.mxu0 %v1212_v1 }
 0x148   :  { %1046 = vmatpush3.msra.mxu0 %v803_v55 }
 0x149   :  { %1047 = vmatprep.subr.mxu0 %v1212_v1 }
 0x14a   :  { %1048 = vmatpush3.msra.mxu0 %v802_v56 }
 0x14b   :  { %1049 = vmatprep.subr.mxu0 %v1212_v1 }
 0x14c   :  { %1050 = vmatpush3.msra.mxu0 %v801_v57 }
 0x14d   :  { %1051 = vmatprep.subr.mxu0 %v1212_v1 }
 0x14e   :  { %1052 = vmatpush3.msra.mxu0 %v800_v58 }
 0x17f   :  { %v552_v59 = vpop.f32.mrf.mxu0 }
 0x180   :  { %v553_v0 = vadd.f32 %v552_v59, %v482_v61 }
 0x181   :  { %v554_v62 = vpop.f32.mrf.mxu0 }
 0x182   :  { %v555_v63 = vadd.f32 %v554_v62, %v484_v60 }
 0x184   :  { %660 = vmatprep.mubr.f32.mxu1 %v555_v63  ;;  %v914_v63 = vld [vmem:[%s1373_s7] ss:$0 sm:$0xff]  ;;  %s1174_s7 = scalar_lea.vmem %s901_s13, 32 }
 0x185   :  { %661 = vmatmul.mubr.f32.vlgmr.msra.gmra.mxu1 %v553_v0  ;;  %p1175_p11 = scmp.ne.s32.totalorder %s901_s13, %s1174_s7  ;;  %p1180_p13 = scmp.lt.s32.totalorder %s1174_s7, %s1174_s7 }
 0x186   :  { %987 = vmatpush3.msra.mxu1 %v690_v38  ;;  %1018 = vmatprep.mubr.msk.f32.mxu1 %vm1213_vm0, %v1212_v1  ;;  %v915_v38 = vld [vmem:[%s1374_s8] ss:$0 sm:$0xff] }
 0x187   :  { %988 = vmatprep.subr.mxu1 %v1212_v1  ;;  %p1181_p0 = por %p1180_p13, %p1179_p12 }
 0x188   :  { %989 = vmatpush3.msra.mxu1 %v689_v2 }
 0x189   :  { %990 = vmatprep.subr.mxu1 %v1212_v1  ;;  %p1182_p1 = pnand %p1181_p0, %p1175_p11 }
 0x18a   :  { %991 = vmatpush3.msra.mxu1 %v688_v3 }
 0x18b   :  { %992 = vmatprep.subr.mxu1 %v1212_v1 }
 0x18c   :  { %993 = vmatpush3.msra.mxu1 %v687_v4 }
 0x18d   :  { %994 = vmatprep.subr.mxu1 %v1212_v1 }
 0x18e   :  { %995 = vmatpush3.msra.mxu1 %v686_v5 }
 0x18f   :  { %996 = vmatprep.subr.mxu1 %v1212_v1 }
 0x190   :  { %997 = vmatpush3.msra.mxu1 %v685_v6 }
 0x191   :  { %998 = vmatprep.subr.mxu1 %v1212_v1 }
 0x192   :  { %999 = vmatpush3.msra.mxu1 %v684_v7 }
 0x193   :  { %1000 = vmatprep.subr.mxu1 %v1212_v1 }
 0x194   :  { %1001 = vmatpush3.msra.mxu1 %v683_v8 }
 0x195   :  { %1002 = vmatprep.subr.mxu1 %v1212_v1 }
 0x196   :  { %1003 = vmatpush3.msra.mxu1 %v682_v9 }
 0x197   :  { %1004 = vmatprep.subr.mxu1 %v1212_v1 }
 0x198   :  { %1005 = vmatpush3.msra.mxu1 %v681_v10 }
 0x199   :  { %1006 = vmatprep.subr.mxu1 %v1212_v1 }
 0x19a   :  { %1007 = vmatpush3.msra.mxu1 %v680_v11 }
 0x19b   :  { %1008 = vmatprep.subr.mxu1 %v1212_v1 }
 0x19c   :  { %1009 = vmatpush3.msra.mxu1 %v679_v12 }
 0x19d   :  { %1010 = vmatprep.subr.mxu1 %v1212_v1 }
 0x19e   :  { %1011 = vmatpush3.msra.mxu1 %v678_v13 }
 0x19f   :  { %1012 = vmatprep.subr.mxu1 %v1212_v1 }
 0x1a0   :  { %1013 = vmatpush3.msra.mxu1 %v677_v15 }
 0x1a1   :  { %1014 = vmatprep.subr.mxu1 %v1212_v1 }
 0x1a2   :  { %1015 = vmatpush3.msra.mxu1 %v676_v16 }
 0x1a3   :  { %1016 = vmatprep.subr.mxu1 %v1212_v1  ;;  %v916_v1 = vld [vmem:[%s1376_s10] ss:$0 sm:$0xff] }
 0x1a4   :  { %1017 = vmatpush3.msra.mxu1 %v675_v17 }
 0x245   :  { %v949_v18 = vpop.f32.mrf.mxu1 }
 0x247   :  { %v950_v20 = vpop.f32.mrf.mxu1 }
 0x248   :  { %v951_v21 = vadd.f32 %v950_v20, %v949_v18 }
 0x24a   :  { %v663_v22 = vadd.f32 %v951_v21, %v912_v19 }
 0x24c   :  { %v667_v23 = vmul.f32 0.044715, %v663_v22  ;;  %v666_v28 = vmul.f32 0.5, %v663_v22 }
 0x24e   :  { %v668_v24 = vmul.f32 %v667_v23, %v663_v22 }
 0x250   :  { %v669_v25 = vmul.f32 %v668_v24, %v663_v22 }
 0x252   :  { %v670_v26 = vadd.f32 %v669_v25, %v663_v22 }
 0x254   :  { %v671_v14 = vmul.f32 0.7978846, %v670_v26 }
 0x256   :  { %1070 = vtanh.f32 %v671_v14 }
 0x263   :  { %v1071_v27 = vpop.eup %1070 }
 0x264   :  { %v673_v29 = vadd.f32 1.0, %v1071_v27 }
 0x266   :  { %v674_v30 = vmul.f32 %v673_v29, %v666_v28 }
 0x268   :  { %1019 = vmatmul.mubr.f32.vlgmr.msra.gmra.mxu1 %v674_v30 }
 0x328   :  { %v764_v32 = vpop.f32.mrf.mxu1 }
 0x329   :  { %v765_v33 = vadd.f32 %v913_v31, %v764_v32 }
 0x32a   :  { %v1020_v34 = vpop.f32.mrf.mxu1 }
 0x32b   :  { %v768_v35 = vadd.f32 %v765_v33, %v663_v22 }
 0x32d   :  { %v772_v36 = vsel %vm771_vm1, %v768_v35, 0.0 }
 0x32e   :  { %773 = vadd.xlane.f32.xlu0 %v772_v36 }
 0x3b7   :  { %v774_v42 = vpop.xlane.xlu0 %773 }
 0x3b8   :  { %v776_v43 = vmul.f32 0.0078125, %v774_v42 }
 0x3ba   :  { %v777_v44 = vsub.f32 %v768_v35, %v776_v43 }
 0x3bc   :  { %v778_v45 = vmul.f32 %v777_v44, %v777_v44 }
 0x3be   :  { %v779_v46 = vsel %vm771_vm1, %v778_v45, 0.0 }
 0x3bf   :  { %780 = vadd.xlane.f32.xlu0 %v779_v46 }
 0x448   :  { %v781_v59 = vpop.xlane.xlu0 %780 }
 0x449   :  { %v782_v60 = vmul.f32 0.0078125, %v781_v59 }
 0x44b   :  { %v783_v61 = vadd.f32 1e-05, %v782_v60 }
 0x44d   :  { %1072 = vrsqrt.f32 %v783_v61 }
 0x45a   :  { %v1073_v62 = vpop.eup %1072 }
 0x45b   :  { %v785_v0 = vmul.f32 %v1073_v62, %v777_v44 }
 0x45d   :  { %v792_v2 = vmul.f32 %v914_v63, %v785_v0 }
 0x45f   :  { %v799_v3 = vadd.f32 %v915_v38, %v792_v2 }
 0x461   :  { %1054 = vmatmul.mubr.f32.vlgmr.msra.gmra.mxu0 %v799_v3 }
 0x521   :  { %v889_v4 = vpop.f32.mrf.mxu0 }
 0x522   :  { %v890_v5 = vadd.f32 %v916_v1, %v889_v4 }
 0x523   :  { %v1055_v6 = vpop.f32.mrf.mxu0 }
 0x524   :  { %893 = vst [vmem:[#allocation11] sm:$0x3] %v890_v5 }
 0x525   :  { %1185 = shalt.err (!%p1182_p1)
}
 0x526   :  { %903 = dma.vmem_to_hbm [thread:$0]  %s901_s13, 32, %s1377_s11, [#allocation4]  }
 0x527   :  { %1200 = dma.done.wait [#allocation4], 32  }
 0x528   :  { %1201 = vsyncadd [#allocation4], 4294967264 }
 0x529   :  { %907 = vsyncpa [#allocation3], 1 }
 0x52a   :  { %908 = vsyncpa [#allocation6], 1 }
 0x52b   :  { %909 = vsyncpa [#allocation9], 1 }
 0x52c   :  { %910 = vsyncpa [#allocation4], 1 }

</bundles_post_ra>
